<compile_context>
chip_gen: v6e
topology: v6e:2x2x1
jax: 0.10.0
libtpu: 0.0.40
codegen_flags: <defaults>
</compile_context>

<pallas_src>
import functools

import jax
import jax.numpy as jnp
from jax.experimental import pallas as pl
from jax.experimental.pallas import tpu as pltpu


LANE = 128
T_TILE_MAX = 4096          # upper bound on the time tile (lanes)
X_BLOCK_BYTES = 8 << 20    # per-buffer byte budget for the streamed x block


def _round_down(x, m):
    return (x // m) * m


def audio_stream_kernel(t_ref, inv_t_ref, x_ref, w_ref, b_ref, o_ref, acc_ref,
                        *, t_tile):
    """Grid (num_b, num_t); time is the last ('arbitrary') reduction axis.

    t_ref      (1,) int32   SMEM  true T (tail masking)
    inv_t_ref  (1,) float32 SMEM  1 / T
    x_ref      (b_tile, C, t_tile)     pase features (f32 or bf16)
    w_ref      (C, H)                  fc1.weight.T (VMEM-resident)
    b_ref      (1, H)                  fc1.bias     (VMEM-resident)
    o_ref      (b_tile, H)             output block
    acc_ref    (b_tile, C, 128) f32    partial-sum scratch
    """
    ti = pl.program_id(1)

    @pl.when(ti == 0)
    def _():
        acc_ref[...] = jnp.zeros_like(acc_ref)

    x = x_ref[...].astype(jnp.float32)                        # (b_tile, C, t_tile)

    # Mask the ragged tail of the last time tile (the input is NOT padded in HBM;
    # for all earlier tiles limit >= t_tile so the mask is all-true).
    col = jax.lax.broadcasted_iota(jnp.int32, (1, 1, t_tile), 2)
    limit = t_ref[0] - ti * t_tile
    x = jnp.where(col < limit, x, 0.0)

    # Deferred cross-lane reduce: per-step work is plain VPU adds over 128-lane
    # slabs (hides fully under the DMA); the single XLU lane-reduce runs once in
    # the finalize step instead of every time step.
    partial = x[..., 0:LANE]
    for k in range(1, t_tile // LANE):
        partial = partial + x[..., k * LANE:(k + 1) * LANE]
    acc_ref[...] += partial

    @pl.when(ti == pl.num_programs(1) - 1)
    def _():
        pooled = jnp.sum(acc_ref[...], axis=-1) * inv_t_ref[0]   # mean over true T
        act = jnp.maximum(pooled, 0.0)                           # ReLU
        y = jnp.dot(act, w_ref[...], preferred_element_type=jnp.float32)
        o_ref[...] = (y + b_ref[...]).astype(o_ref.dtype)


def audio_stream_forward(feats, w_t, bias):
    """feats: (B, 100, T) pase output (f32 or bf16); w_t: (100, 1024) = fc1.weight.T; bias: (1024,)."""
    B, C, T = feats.shape
    H = w_t.shape[1]
    esize = jnp.dtype(feats.dtype).itemsize
    w_t = w_t.astype(jnp.float32)
    bias2d = bias.reshape(1, H).astype(jnp.float32)

    # --- Tile geometry (no HBM padding / copying of the feature stream). ---
    # b_tile: full batch when small, 64 (sublane-aligned, better MXU LHS fill)
    # for large batches.  The leading batch dim needs no (8,128) alignment; the
    # last two block dims are (C = full dim, t_tile % 128 == 0) which satisfies
    # the TPU tiling rule, and partial edge blocks are masked / clipped.
    b_tile = B if B <= 64 else 64

    lanes_cap = max(LANE, _round_down(X_BLOCK_BYTES // (b_tile * C * esize), LANE))
    if T >= LANE:
        t_tile = max(LANE, min(T_TILE_MAX, lanes_cap, _round_down(T, LANE)))
    else:
        t_tile = LANE   # single (partial) tile; the in-kernel mask handles the tail
    num_b = pl.cdiv(B, b_tile)
    num_t = pl.cdiv(T, t_tile)

    # Explicit scoped-VMEM budget: double-buffered x block + resident weight/bias
    # + output block + accumulator + headroom.  Clamped under v7x's 64 MiB/TC.
    x_block_bytes = b_tile * C * t_tile * esize
    vmem_bytes = (2 * x_block_bytes       # x double buffer
                  + 2 * C * H * 4         # weight
                  + 2 * H * 4             # bias
                  + 2 * b_tile * H * 4    # output block
                  + b_tile * C * LANE * 4 # accumulator scratch
                  + (4 << 20))            # compiler-internal headroom
    vmem_bytes = min(max(vmem_bytes, 16 << 20), 60 << 20)

    # Scalar-prefetch args: true T (tail mask) and 1/T (mean scale).  Keeping
    # these out of the trace avoids a Mosaic recompile per distinct audio length.
    t_scalar = jnp.array([T], dtype=jnp.int32)
    inv_t_scalar = jnp.array([1.0 / T], dtype=jnp.float32)

    kernel = functools.partial(audio_stream_kernel, t_tile=t_tile)

    # NOTE: pipeline_mode=pl.Buffered(1) on the resident weight/bias specs would
    # drop their redundant second buffer (~0.4 MB VMEM); omitted for portability.
    # TODO(synk): on v7x with num_b == 1, a leading parallel axis splitting the T
    # range across the two TensorCores (partial-sum outputs + tiny wrapper
    # combine) would roughly double small-batch throughput.
    out = pl.pallas_call(
        kernel,
        out_shape=jax.ShapeDtypeStruct((B, H), jnp.float32),
        grid_spec=pltpu.PrefetchScalarGridSpec(
            num_scalar_prefetch=2,
            grid=(num_b, num_t),
            in_specs=[
                pl.BlockSpec((b_tile, C, t_tile), lambda bi, ti, t_s, it_s: (bi, 0, ti)),
                pl.BlockSpec((C, H), lambda bi, ti, t_s, it_s: (0, 0)),   # resident
                pl.BlockSpec((1, H), lambda bi, ti, t_s, it_s: (0, 0)),   # resident
            ],
            out_specs=pl.BlockSpec((b_tile, H), lambda bi, ti, t_s, it_s: (bi, 0)),
            scratch_shapes=[pltpu.VMEM((b_tile, C, LANE), jnp.float32)],
        ),
        compiler_params=pltpu.CompilerParams(
            dimension_semantics=("parallel", "arbitrary"),
            vmem_limit_bytes=int(vmem_bytes),
        ),
        cost_estimate=pl.CostEstimate(
            flops=2 * B * C * H + B * C * T,
            transcendentals=0,
            bytes_accessed=B * C * T * esize + C * H * 4 + H * 4 + B * H * 4,
        ),
    )(t_scalar, inv_t_scalar, feats, w_t, bias2d)

    return out


def reference_forward(feats, w_t, bias):
    pooled = jnp.mean(feats.astype(jnp.float32), axis=-1)
    act = jnp.maximum(pooled, 0.0)
    return act @ w_t.astype(jnp.float32) + bias.reshape(1, -1).astype(jnp.float32)


if __name__ == "__main__":
    key = jax.random.PRNGKey(0)
    k_x, k_w, k_b = jax.random.split(key, 3)

    # pase feature dim is fixed at 100 by fc1; H = 1024.  T = 200 exercises the
    # ragged final time tile (two 128-wide tiles, second one masked at col 72).
    B, C, T, H = 2, 100, 200, 1024

    feats_f32 = jax.random.normal(k_x, (B, C, T), dtype=jnp.float32)
    w_pt = jax.random.normal(k_w, (H, C), dtype=jnp.float32) * 0.02  # fc1.weight (1024, 100)
    bias = jax.random.normal(k_b, (H,), dtype=jnp.float32) * 0.02
    w_t = w_pt.T                                                     # (100, 1024)

    # f32 streaming path (tight check; exercises ragged-T masking, no HBM padding).
    out = jax.block_until_ready(audio_stream_forward(feats_f32, w_t, bias))
    ref = reference_forward(feats_f32, w_t, bias)
    assert out.shape == (B, H), out.shape
    assert jnp.allclose(out, ref, atol=1e-3, rtol=1e-3), "f32 mismatch vs reference"

    # bf16 streaming path (halves HBM traffic of the dominant (B, 100, T) stream;
    # accumulation stays f32 in-kernel).
    feats_bf16 = feats_f32.astype(jnp.bfloat16)
    out_bf = jax.block_until_ready(audio_stream_forward(feats_bf16, w_t, bias))
    ref_bf = reference_forward(feats_bf16, w_t, bias)
    assert jnp.allclose(out_bf, ref_bf, atol=2e-2, rtol=2e-2), "bf16 mismatch vs reference"

    print("KERNEL_OK")
</pallas_src>

<mosaic_0001>
module attributes {stable_mosaic.version = 11 : i64} {
  func.func @audio_stream_kernel(%arg0: i32, %arg1: i32, %arg2: memref<1xi32, #tpu.memory_space<smem>>, %arg3: memref<1xf32, #tpu.memory_space<smem>>, %arg4: memref<2x100x128xf32, #tpu.memory_space<vmem>>, %arg5: memref<100x1024xf32, #tpu.memory_space<vmem>>, %arg6: memref<1x1024xf32, #tpu.memory_space<vmem>>, %arg7: memref<2x1024xf32, #tpu.memory_space<vmem>>, %arg8: memref<2x100x128xf32, #tpu.memory_space<vmem>>) attributes {dimension_semantics = [#tpu.dimension_semantics<parallel>, #tpu.dimension_semantics<arbitrary>], iteration_bounds = array<i64: 1, 2>, scalar_prefetch = 2 : i64, scratch_operands = 1 : i64, tpu.core_type = #tpu.core_type<tc>, window_params = [{transform_indices = @transform_0, window_bounds = array<i64: 2, 100, 128>}, {pipeline_mode = #tpu.pipeline_mode<synchronous>, transform_indices = @transform_1, window_bounds = array<i64: 100, 1024>}, {pipeline_mode = #tpu.pipeline_mode<synchronous>, transform_indices = @transform_2, window_bounds = array<i64: 1, 1024>}, {transform_indices = @transform_3, window_bounds = array<i64: 2, 1024>}]} {
    %c0_i32 = arith.constant 0 : i32
    %0 = arith.cmpi eq, %arg1, %c0_i32 : i32
    %1 = arith.extui %0 : i1 to i32
    %c0_i32_0 = arith.constant 0 : i32
    %2 = arith.cmpi ne, %1, %c0_i32_0 : i32
    scf.if %2 {
      %cst_11 = arith.constant 0.000000e+00 : f32
      %20 = vector.broadcast %cst_11 : f32 to vector<2x100x128xf32>
      %c0_12 = arith.constant 0 : index
      %c0_13 = arith.constant 0 : index
      %c0_14 = arith.constant 0 : index
      %21 = vector.load %arg8[%c0_12, %c0_13, %c0_14] : memref<2x100x128xf32, #tpu.memory_space<vmem>>, vector<2x100x128xf32>
      tpu.vector_store %arg8[%c0_12, %c0_13, %c0_14], %20 {strides = array<i32>} : memref<2x100x128xf32, #tpu.memory_space<vmem>>, vector<2x100x128xf32>,
    } else {
    }
    %c0 = arith.constant 0 : index
    %c0_1 = arith.constant 0 : index
    %c0_2 = arith.constant 0 : index
    %3 = vector.load %arg4[%c0, %c0_1, %c0_2] : memref<2x100x128xf32, #tpu.memory_space<vmem>>, vector<2x100x128xf32>
    %4 = tpu.iota {dimensions = array<i32: 2>} : vector<1x1x128xi32>
    %c0_3 = arith.constant 0 : index
    %5 = memref.load %arg2[%c0_3] : memref<1xi32, #tpu.memory_space<smem>>
    %c128_i32 = arith.constant 128 : i32
    %6 = arith.muli %arg1, %c128_i32 : i32
    %7 = arith.subi %5, %6 : i32
    %8 = vector.broadcast %7 : i32 to vector<1x1x128xi32>
    %9 = arith.cmpi slt, %4, %8 : vector<1x1x128xi32>
    %cst = arith.constant 0.000000e+00 : f32
    %10 = vector.shape_cast %9 : vector<1x1x128xi1> to vector<1x1x128xi1>
    %11 = vector.broadcast %10 : vector<1x1x128xi1> to vector<2x100x128xi1>
    %12 = vector.broadcast %cst : f32 to vector<2x100x128xf32>
    %13 = arith.select %11, %3, %12 : vector<2x100x128xi1>, vector<2x100x128xf32>
    %c0_4 = arith.constant 0 : index
    %c0_5 = arith.constant 0 : index
    %c0_6 = arith.constant 0 : index
    %14 = vector.load %arg8[%c0_4, %c0_5, %c0_6] : memref<2x100x128xf32, #tpu.memory_space<vmem>>, vector<2x100x128xf32>
    %15 = arith.addf %14, %13 : vector<2x100x128xf32>
    %c0_7 = arith.constant 0 : index
    %c0_8 = arith.constant 0 : index
    %c0_9 = arith.constant 0 : index
    %16 = vector.load %arg8[%c0_7, %c0_8, %c0_9] : memref<2x100x128xf32, #tpu.memory_space<vmem>>, vector<2x100x128xf32>
    tpu.vector_store %arg8[%c0_7, %c0_8, %c0_9], %15 {strides = array<i32>} : memref<2x100x128xf32, #tpu.memory_space<vmem>>, vector<2x100x128xf32>,
    %c1_i32 = arith.constant 1 : i32
    %17 = arith.cmpi eq, %arg1, %c1_i32 : i32
    %18 = arith.extui %17 : i1 to i32
    %c0_i32_10 = arith.constant 0 : i32
    %19 = arith.cmpi ne, %18, %c0_i32_10 : i32
    scf.if %19 {
      %c0_11 = arith.constant 0 : index
      %c0_12 = arith.constant 0 : index
      %c0_13 = arith.constant 0 : index
      %20 = vector.load %arg8[%c0_11, %c0_12, %c0_13] : memref<2x100x128xf32, #tpu.memory_space<vmem>>, vector<2x100x128xf32>
      %cst_14 = arith.constant dense<0.000000e+00> : vector<2x100xf32>
      %21 = vector.multi_reduction <add>, %20, %cst_14 [2] : vector<2x100x128xf32> to vector<2x100xf32>
      %c0_15 = arith.constant 0 : index
      %22 = memref.load %arg3[%c0_15] : memref<1xf32, #tpu.memory_space<smem>>
      %23 = vector.broadcast %22 : f32 to vector<2x100xf32>
      %24 = arith.mulf %21, %23 : vector<2x100xf32>
      %cst_16 = arith.constant 0.000000e+00 : f32
      %25 = vector.broadcast %cst_16 : f32 to vector<2x100xf32>
      %26 = arith.maximumf %24, %25 : vector<2x100xf32>
      %c0_17 = arith.constant 0 : index
      %c0_18 = arith.constant 0 : index
      %27 = vector.load %arg5[%c0_17, %c0_18] : memref<100x1024xf32, #tpu.memory_space<vmem>>, vector<100x1024xf32>
      %cst_19 = arith.constant dense<0.000000e+00> : vector<2x1024xf32>
      %28 = tpu.matmul %26, %27, %cst_19 {dimension_numbers = #tpu.dot_dimension_numbers<[1], [0], [0], [1], [0, 0, 1, 1], [], []>} : vector<2x100xf32>, vector<100x1024xf32>, vector<2x1024xf32> -> vector<2x1024xf32>
      %c0_20 = arith.constant 0 : index
      %c0_21 = arith.constant 0 : index
      %29 = vector.load %arg6[%c0_20, %c0_21] : memref<1x1024xf32, #tpu.memory_space<vmem>>, vector<1x1024xf32>
      %30 = vector.broadcast %29 : vector<1x1024xf32> to vector<2x1024xf32>
      %31 = arith.addf %28, %30 : vector<2x1024xf32>
      %c0_22 = arith.constant 0 : index
      %c0_23 = arith.constant 0 : index
      %32 = vector.load %arg7[%c0_22, %c0_23] : memref<2x1024xf32, #tpu.memory_space<vmem>>, vector<2x1024xf32>
      tpu.vector_store %arg7[%c0_22, %c0_23], %31 {strides = array<i32>} : memref<2x1024xf32, #tpu.memory_space<vmem>>, vector<2x1024xf32>,
    } else {
    }
    return
  }
  func.func @transform_0(%arg0: i32, %arg1: i32, %arg2: memref<1xi32, #tpu.memory_space<smem>>, %arg3: memref<1xf32, #tpu.memory_space<smem>>) -> (i32, i32, i32) {
    %c0_i32 = arith.constant 0 : i32
    %c0_i32_0 = arith.constant 0 : i32
    return %arg0, %c0_i32, %arg1 : i32, i32, i32
  }
  func.func @transform_1(%arg0: i32, %arg1: i32, %arg2: memref<1xi32, #tpu.memory_space<smem>>, %arg3: memref<1xf32, #tpu.memory_space<smem>>) -> (i32, i32) {
    %c0_i32 = arith.constant 0 : i32
    %c0_i32_0 = arith.constant 0 : i32
    %c0_i32_1 = arith.constant 0 : i32
    return %c0_i32, %c0_i32_0 : i32, i32
  }
  func.func @transform_2(%arg0: i32, %arg1: i32, %arg2: memref<1xi32, #tpu.memory_space<smem>>, %arg3: memref<1xf32, #tpu.memory_space<smem>>) -> (i32, i32) {
    %c0_i32 = arith.constant 0 : i32
    %c0_i32_0 = arith.constant 0 : i32
    %c0_i32_1 = arith.constant 0 : i32
    return %c0_i32, %c0_i32_0 : i32, i32
  }
  func.func @transform_3(%arg0: i32, %arg1: i32, %arg2: memref<1xi32, #tpu.memory_space<smem>>, %arg3: memref<1xf32, #tpu.memory_space<smem>>) -> (i32, i32) {
    %c0_i32 = arith.constant 0 : i32
    %c0_i32_0 = arith.constant 0 : i32
    return %arg0, %c0_i32 : i32, i32
  }
}

</mosaic_0001>

<bundles_post_ra>
// kernel: tpu_custom_call.1
= control target key start
LH: loop header
LB: loop body
LE: loop exit
PB: predicated region body
PF: predicated region fallthrough
CT: control target
= control target key end

     0   :  { %s2039_s0 = inlined_call_operand.<no memory space> [shape: s32[1], index: 0, kind: input, shape index: {}]   ;;  %s2040_s1 = inlined_call_operand.<no memory space> [shape: f32[1], index: 1, kind: input, shape index: {}]   ;;  %s2041_s2 = inlined_call_operand.vmem [shape: f32[2,100,200], index: 2, kind: input, shape index: {}]   ;;  %s2042_s3 = inlined_call_operand.hbm [shape: f32[100,1024], index: 3, kind: input, shape index: {}]   ;;  %s2043_s4 = inlined_call_operand.vmem [shape: f32[1,1024], index: 4, kind: input, shape index: {}]   ;;  %s2044_s5 = inlined_call_operand.hbm [shape: f32[2,1024], index: 5, kind: output, shape index: {}]  }
   0x1   :  { %10 = sst [smem:[#allocation4]] %s2039_s0 }
   0x2   :  { %11 = sst [smem:[#allocation5]] %s2040_s1 }
   0x3   :  { %12 = vsyncpa [#allocation8], 0 }
   0x4   :  { %13 = vsyncpa [#allocation9], 0  ;;  %s1637_s22 = smov 0   ;;  %s1639_s23 = smov 0  }
   0x5   :  { %s1641_s24 = smov 0   ;;  %s1643_s25 = smov 0  }
   0x6   :  { %s1645_s26 = smov 0  }
   0x7 LB: > { %s1405_s0 = sadd.s32 4294967295, %s1592_s26   ;;  %s28_s1 = sadd.s32 1, %s1588_s25  ;;  %s1592_s26 = sphi %s1645_s26, %s19_s26   ;;  %s1588_s25 = sphi %s1643_s25, %s2054_s25   ;;  %s1584_s24 = sphi %s1641_s24, %s2053_s24   ;;  %s1580_s23 = sphi %s1639_s23, %s2052_s23   ;;  %s1576_s22 = sphi %s1637_s22, %s2051_s22  }
   0x8   : > { %p29_p0 = scmp.ge.s32.totalorder %s28_s1, 2  ;;  %s40_s27 = sadd.s32 1, %s1580_s23 }
   0x9   : > { %p47_p1 = scmp.ne.s32.totalorder %s1580_s23, %s1576_s22  ;;  %p48_p2 = scmp.eq.s32.totalorder %s1592_s26, 0 }
   0xa   : > { %s2056_s1 = smov (%p29_p0, %s28_s1), 0  ;;  %p1406_p4 = scmp.ge.s32.totalorder %s1592_s26, 1 }
   0xb   : > { %p1670_p3 = por %p48_p2, %p47_p1  ;;  %s36_s29 = ssub.s32 %s1588_s25, %s2056_s1 }
   0xc   : > { %p132_p5 = scmp.lt.s32.totalorder %s1592_s26, 3  ;;  %p38_p6 = scmp.eq.s32.totalorder %s36_s29, 0 }
   0xd   : > { %p1684_p8 = scmp.eq.s32.totalorder %s1405_s0, 0  ;;  %s1594_s8 = smov [#allocation7]  }
   0xe   : > { %p1678_p7 = pnand %p1406_p4, %p132_p5  ;;  %s144_s9 = sshll.u32 %s1594_s8, 4  ;;  %s145_s9 = int_to_ptr.vmem [resolvable:$true] %s144_s9 }
   0xf   : > { %s1689_s7 = scalar_select %p38_p6, %s1580_s23, %s40_s27  }
  0x10   : > { %p1441_p9 = pneg %p1678_p7  ;;  %s1507_s10 = scalar_lea.vmem %s145_s9, 13312 }
  0x11   : > { %p1508_p12 = scmp.ne.s32.totalorder %s145_s9, %s1507_s10  ;;  %p1515_p1 = scmp.lt.s32.totalorder %s145_s9, %s145_s9 }
  0x12   : > { %p1442_p10 = pnand %p1684_p8, %p1441_p9  ;;  %p1516_p2 = scmp.lt.s32.totalorder %s1507_s10, %s1507_s10 }
  0x14   : > { %p1498_p11 = pneg %p1442_p10  ;;  %p1517_p4 = por %p1516_p2, %p1515_p1 }
  0x16   : > { %p1510_p13 = pnand %p1508_p12, %p1498_p11 }
  0x18   : > { %p1511_p0 = pneg %p1510_p13 }
  0x1a   : > { %p1518_p5 = pnand %p1517_p4, %p1511_p0 }
  0x1c   : > { %1521 = shalt.err (!%p1518_p5)
}
  0x1d   : > { %s1595_s11 = smov 1024   ;;  %s1596_s12 = smov 64  }
  0x1e   : > { %1444 = dma.hbm_to_vmem [thread:$0]  (!%p1442_p10), %s2042_s3, 13312, %s145_s9, [#allocation8], %s1595_s11, %s1595_s11, %s1596_s12  }
  0x1f   : > { %p1408_p6 = scmp.ge.s32.totalorder %s1592_s26, 2 }
  0x21   : > { %157 = sbr.rel (%p1408_p6) target bundleno = 55 (0x37), region = 24 }
  0x26   : > { %160 = sbr.rel (!%p1670_p3) target bundleno = 55 (0x37), region = 28  ;;  %s162_s15 = sand.u32 (%p1670_p3), 1, %s1580_s23  }
  0x27   : > { %s1409_s16 = sshll.u32 (%p1670_p3), %s1588_s25, 3  ;;  %s1431_s17 = smul.u32 (%p1670_p3), 208, %s162_s15 }
  0x28   : > { %s1706_s20 = scalar_lea.vmem (%p1670_p3), %s2041_s2, %s1409_s16 }
  0x29   : > { %v248_v0 = vld [vmem:[%s1706_s20] sm:$0xff] (%p1670_p3)  ;;  %v250_v1 = vld [vmem:[%s1706_s20 + $0x10] sm:$0xff] (%p1670_p3)  ;;  %s1714_s21 = scalar_lea.vmem (%p1670_p3), [#allocation6], %s1431_s17 }
  0x2a   : > { %v252_v2 = vld [vmem:[%s1706_s20 + $0x20] sm:$0xff] (%p1670_p3)  ;;  %v254_v3 = vld [vmem:[%s1706_s20 + $0x30] sm:$0xff] (%p1670_p3)  ;;  %249 = vst [vmem:[%s1714_s21] sm:$0xff] (%p1670_p3), %v248_v0  ;;  %251 = vst [vmem:[%s1714_s21 + $0x8] sm:$0xff] (%p1670_p3), %v250_v1 }
  0x2b   : > { %v256_v4 = vld [vmem:[%s1706_s20 + $0x40] sm:$0xff]  ;;  %v258_v5 = vld [vmem:[%s1706_s20 + $0x50] sm:$0xff]  ;;  %253 = vst [vmem:[%s1714_s21 + $0x10] sm:$0xff] %v252_v2  ;;  %255 = vst [vmem:[%s1714_s21 + $0x18] sm:$0xff] %v254_v3 }
  0x2c   : > { %257 = vst [vmem:[%s1714_s21 + $0x20] sm:$0xff] %v256_v4  ;;  %259 = vst [vmem:[%s1714_s21 + $0x28] sm:$0xff] %v258_v5  ;;  %v260_v6 = vld [vmem:[%s1706_s20 + $0x60] sm:$0xff]  ;;  %v262_v7 = vld [vmem:[%s1706_s20 + $0x70] sm:$0xff] }
  0x2d   : > { %v264_v8 = vld [vmem:[%s1706_s20 + $0x80] sm:$0xff]  ;;  %261 = vst [vmem:[%s1714_s21 + $0x30] sm:$0xff] %v260_v6  ;;  %263 = vst [vmem:[%s1714_s21 + $0x38] sm:$0xff] %v262_v7  ;;  %v266_v9 = vld [vmem:[%s1706_s20 + $0x90] sm:$0xff] }
  0x2e   : > { %265 = vst [vmem:[%s1714_s21 + $0x40] sm:$0xff] %v264_v8  ;;  %v268_v10 = vld [vmem:[%s1706_s20 + $0xa0] sm:$0xff]  ;;  %v270_v11 = vld [vmem:[%s1706_s20 + $0xb0] sm:$0xff]  ;;  %267 = vst [vmem:[%s1714_s21 + $0x48] sm:$0xff] %v266_v9 }
  0x2f   : > { %269 = vst [vmem:[%s1714_s21 + $0x50] sm:$0xff] %v268_v10  ;;  %271 = vst [vmem:[%s1714_s21 + $0x58] sm:$0xff] %v270_v11  ;;  %v272_v12 = vld [vmem:[%s1706_s20 + $0xc0] sm:$0xff]  ;;  %v274_v13 = vld [vmem:[%s1706_s20 + $0xd0] sm:$0xff] }
  0x30   : > { %v276_v14 = vld [vmem:[%s1706_s20 + $0xe0] sm:$0xff]  ;;  %273 = vst [vmem:[%s1714_s21 + $0x60] sm:$0xff] %v272_v12  ;;  %275 = vst [vmem:[%s1714_s21 + $0x68] sm:$0xff] %v274_v13  ;;  %v278_v15 = vld [vmem:[%s1706_s20 + $0xf0] sm:$0xff] }
  0x31   : > { %277 = vst [vmem:[%s1714_s21 + $0x70] sm:$0xff] %v276_v14  ;;  %v280_v16 = vld [vmem:[%s1706_s20 + $0x100] sm:$0xff]  ;;  %v282_v17 = vld [vmem:[%s1706_s20 + $0x110] sm:$0xff]  ;;  %279 = vst [vmem:[%s1714_s21 + $0x78] sm:$0xff] %v278_v15 }
  0x32   : > { %281 = vst [vmem:[%s1714_s21 + $0x80] sm:$0xff] %v280_v16  ;;  %283 = vst [vmem:[%s1714_s21 + $0x88] sm:$0xff] %v282_v17  ;;  %v284_v18 = vld [vmem:[%s1706_s20 + $0x120] sm:$0xff]  ;;  %v286_v19 = vld [vmem:[%s1706_s20 + $0x130] sm:$0xff] }
  0x33   : > { %v288_v20 = vld [vmem:[%s1706_s20 + $0x140] sm:$0xff]  ;;  %285 = vst [vmem:[%s1714_s21 + $0x90] sm:$0xff] %v284_v18  ;;  %287 = vst [vmem:[%s1714_s21 + $0x98] sm:$0xff] %v286_v19  ;;  %v290_v21 = vld [vmem:[%s1706_s20 + $0x150] sm:$0xff] }
  0x34   : > { %289 = vst [vmem:[%s1714_s21 + $0xa0] sm:$0xff] %v288_v20  ;;  %v292_v22 = vld [vmem:[%s1706_s20 + $0x160] sm:$0xff]  ;;  %v294_v23 = vld [vmem:[%s1706_s20 + $0x170] sm:$0xff]  ;;  %291 = vst [vmem:[%s1714_s21 + $0xa8] sm:$0xff] %v290_v21 }
  0x35   : > { %293 = vst [vmem:[%s1714_s21 + $0xb0] sm:$0xff] %v292_v22  ;;  %295 = vst [vmem:[%s1714_s21 + $0xb8] sm:$0xff] %v294_v23  ;;  %v296_v24 = vld [vmem:[%s1706_s20 + $0x180] sm:$0xff]  ;;  %v298_v25 = vld [vmem:[%s1706_s20 + $0x190] sm:$0xff] }
  0x36   : > { %297 = vst [vmem:[%s1714_s21 + $0xc0] sm:$0xff] %v296_v24  ;;  %299 = vst [vmem:[%s1714_s21 + $0xc8] sm:$0xff] %v298_v25 }
  0x37 PF: > { %308 = sbr.rel (%p1678_p7) target bundleno = 551 (0x227), region = 66  ;;  %s311_s27 = sand.u32 (!%p1678_p7), 1, %s1576_s22  }
  0x38   : > { %s1432_s28 = smul.u32 (!%p1678_p7), 208, %s311_s27 }
  0x3a   : > { %s1765_s29 = scalar_lea.vmem (!%p1678_p7), [#allocation6], %s1432_s28 }
  0x3c   : > { %1567 = dma.done.wait (%p1684_p8), [#allocation8], 13312  }
  0x3d   : > { %1569 = vsyncadd (%p1684_p8), [#allocation8], 4294953984  ;;  %p1412_p3 = scmp.ne.s32.totalorder %s1584_s24, 0 }
  0x3f   : > { %337 = sbr.rel (%p1412_p3) target bundleno = 82 (0x52), region = 78 }
  0x44   : > { %v1597_v26 = vmov 0.0  }
  0x45   : > { %338 = vst [vmem:[#allocation2 + $0xb0] sm:$0xff] %v1597_v26  ;;  %339 = vst [vmem:[#allocation2] sm:$0xff] %v1597_v26 }
  0x46   : > { %340 = vst [vmem:[#allocation2 + $0x10] sm:$0xff] %v1597_v26  ;;  %341 = vst [vmem:[#allocation2 + $0x48] sm:$0xff] %v1597_v26 }
  0x47   : > { %342 = vst [vmem:[#allocation2 + $0x60] sm:$0xff] %v1597_v26  ;;  %343 = vst [vmem:[#allocation2 + $0x28] sm:$0xff] %v1597_v26 }
  0x48   : > { %344 = vst [vmem:[#allocation2 + $0x40] sm:$0xff] %v1597_v26  ;;  %345 = vst [vmem:[#allocation2 + $0x78] sm:$0xff] %v1597_v26 }
  0x49   : > { %346 = vst [vmem:[#allocation2 + $0x80] sm:$0xff] %v1597_v26  ;;  %347 = vst [vmem:[#allocation2 + $0xa8] sm:$0xff] %v1597_v26 }
  0x4a   : > { %348 = vst [vmem:[#allocation2 + $0x50] sm:$0xff] %v1597_v26  ;;  %349 = vst [vmem:[#allocation2 + $0x30] sm:$0xff] %v1597_v26 }
  0x4b   : > { %350 = vst [vmem:[#allocation2 + $0x88] sm:$0xf] %v1597_v26  ;;  %351 = vst [vmem:[#allocation2 + $0x70] sm:$0xff] %v1597_v26 }
  0x4c   : > { %352 = vst [vmem:[#allocation2 + $0x8] sm:$0xff] %v1597_v26  ;;  %353 = vst [vmem:[#allocation2 + $0x38] sm:$0xff] %v1597_v26 }
  0x4d   : > { %354 = vst [vmem:[#allocation2 + $0x20] sm:$0xff] %v1597_v26  ;;  %355 = vst [vmem:[#allocation2 + $0xb8] sm:$0xff] %v1597_v26 }
  0x4e   : > { %356 = vst [vmem:[#allocation2 + $0x58] sm:$0xff] %v1597_v26  ;;  %357 = vst [vmem:[#allocation2 + $0xc8] sm:$0xff] %v1597_v26 }
  0x4f   : > { %358 = vst [vmem:[#allocation2 + $0xa0] sm:$0xff] %v1597_v26  ;;  %359 = vst [vmem:[#allocation2 + $0x90] sm:$0xff] %v1597_v26 }
  0x50   : > { %360 = vst [vmem:[#allocation2 + $0x98] sm:$0xff] %v1597_v26  ;;  %361 = vst [vmem:[#allocation2 + $0x18] sm:$0xff] %v1597_v26 }
  0x51   : > { %362 = vst [vmem:[#allocation2 + $0xc0] sm:$0xff] %v1597_v26  ;;  %363 = vst [vmem:[#allocation2 + $0x68] sm:$0xf] %v1597_v26 }
  0x52 PF: > { %v390_v27 = vlaneseq  ;;  %s392_s22 = sld [smem:[#allocation4]]  ;;  %s1413_s30 = sshll.u32 %s1584_s24, 7  ;;  %v364_v28 = vld [vmem:[%s1765_s29] sm:$0xff]  ;;  %v365_v30 = vld [vmem:[%s1765_s29 + $0x8] sm:$0xff]  ;;  %v366_v31 = vld [vmem:[%s1765_s29 + $0x10] sm:$0xff] }
  0x53   : > { %v425_v32 = vld [vmem:[#allocation2 + $0xb0] sm:$0xff]  ;;  %v426_v33 = vld [vmem:[#allocation2] sm:$0xff]  ;;  %v367_v35 = vld [vmem:[%s1765_s29 + $0x18] sm:$0xff]  ;;  %p1414_p7 = scmp.ne.s32.totalorder %s1584_s24, 1 }
  0x54   : > { %v1775_v29 = vand.u32 127, %v390_v27  ;;  %v427_v34 = vld [vmem:[#allocation2 + $0x10] sm:$0xff]  ;;  %v428_v36 = vld [vmem:[#allocation2 + $0x48] sm:$0xff]  ;;  %v429_v41 = vld [vmem:[#allocation2 + $0x60] sm:$0xff]  ;;  %s588_s24 = sld [smem:[#allocation5]] (!%p1414_p7) }
  0x55   : > { %v368_v37 = vld [vmem:[%s1765_s29 + $0x20] sm:$0xff]  ;;  %v369_v38 = vld [vmem:[%s1765_s29 + $0x28] sm:$0xff]  ;;  %v370_v39 = vld [vmem:[%s1765_s29 + $0x30] sm:$0xff] }
  0x56   : > { %v430_v42 = vld [vmem:[#allocation2 + $0x28] sm:$0xff]  ;;  %v431_v43 = vld [vmem:[#allocation2 + $0x40] sm:$0xff]  ;;  %v432_v45 = vld [vmem:[#allocation2 + $0x78] sm:$0xff] }
  0x57   : > { %v371_v44 = vld [vmem:[%s1765_s29 + $0x38] sm:$0xff]  ;;  %v372_v47 = vld [vmem:[%s1765_s29 + $0x40] sm:$0xff]  ;;  %v373_v48 = vld [vmem:[%s1765_s29 + $0x48] sm:$0xff] }
  0x58   : > { %s394_s6 = ssub.s32 %s392_s22, %s1413_s30  ;;  %v374_v49 = vld [vmem:[%s1765_s29 + $0x50] sm:$0xff]  ;;  %v434_v55 = vld [vmem:[#allocation2 + $0xa8] sm:$0xff]  ;;  %v376_v63 = vld [vmem:[%s1765_s29 + $0x60] sm:$0xf] }
  0x59   : > { %v395_v40 = vstv %s394_s6  ;;  %v433_v54 = vld [vmem:[#allocation2 + $0x80] sm:$0xff]  ;;  %v435_v56 = vld [vmem:[#allocation2 + $0x50] sm:$0xff]  ;;  %v375_v57 = vld [vmem:[%s1765_s29 + $0x58] sm:$0xff] }
  0x5a   : > { %vm1785_vm0 = vcmp.lt.s32.totalorder %v1775_v29, %v395_v40  ;;  %v436_v58 = vld [vmem:[#allocation2 + $0x30] sm:$0xff]  ;;  %v377_v0 = vld [vmem:[%s1765_s29 + $0x68] sm:$0xff]  ;;  %v379_v9 = vld [vmem:[%s1765_s29 + $0x78] sm:$0xff] }
  0x5b   : > { %v399_v50 = vsel %vm1785_vm0, %v364_v28, 0.0  ;;  %v400_v51 = vsel %vm1785_vm0, %v365_v30, 0.0  ;;  %v401_v52 = vsel %vm1785_vm0, %v366_v31, 0.0  ;;  %v402_v53 = vsel %vm1785_vm0, %v367_v35, 0.0  ;;  %v378_v1 = vld [vmem:[%s1765_s29 + $0x70] sm:$0xff]  ;;  %v439_v8 = vld [vmem:[#allocation2 + $0x8] sm:$0xff] }
  0x5c   : > { %v451_v59 = vadd.f32 %v425_v32, %v399_v50  ;;  %v452_v60 = vadd.f32 %v426_v33, %v400_v51  ;;  %v453_v61 = vadd.f32 %v427_v34, %v401_v52  ;;  %v454_v62 = vadd.f32 %v428_v36, %v402_v53  ;;  %v437_v6 = vld [vmem:[#allocation2 + $0x88] sm:$0xf]  ;;  %v438_v7 = vld [vmem:[#allocation2 + $0x70] sm:$0xff]  ;;  %v440_v14 = vld [vmem:[#allocation2 + $0x38] sm:$0xff] }
  0x5d   : > { %v403_v2 = vsel %vm1785_vm0, %v368_v37, 0.0  ;;  %v404_v3 = vsel %vm1785_vm0, %v369_v38, 0.0  ;;  %v405_v4 = vsel %vm1785_vm0, %v370_v39, 0.0  ;;  %v406_v5 = vsel %vm1785_vm0, %v371_v44, 0.0  ;;  %v380_v15 = vld [vmem:[%s1765_s29 + $0x80] sm:$0xff]  ;;  %v381_v16 = vld [vmem:[%s1765_s29 + $0x88] sm:$0xff] }
  0x5e   : > { %477 = vst [vmem:[#allocation2 + $0xb0] sm:$0xff] %v451_v59  ;;  %478 = vst [vmem:[#allocation2] sm:$0xff] %v452_v60  ;;  %v455_v10 = vadd.f32 %v429_v41, %v403_v2  ;;  %v456_v11 = vadd.f32 %v430_v42, %v404_v3  ;;  %v457_v12 = vadd.f32 %v431_v43, %v405_v4  ;;  %v407_v17 = vsel %vm1785_vm0, %v372_v47, 0.0  ;;  %v441_v21 = vld [vmem:[#allocation2 + $0x20] sm:$0xff]  ;;  %v442_v22 = vld [vmem:[#allocation2 + $0xb8] sm:$0xff] }
  0x5f   : > { %479 = vst [vmem:[#allocation2 + $0x10] sm:$0xff] %v453_v61  ;;  %480 = vst [vmem:[#allocation2 + $0x48] sm:$0xff] %v454_v62  ;;  %v458_v13 = vadd.f32 %v432_v45, %v406_v5  ;;  %v408_v18 = vsel %vm1785_vm0, %v373_v48, 0.0  ;;  %v409_v19 = vsel %vm1785_vm0, %v374_v49, 0.0  ;;  %v410_v20 = vsel %vm1785_vm0, %v375_v57, 0.0  ;;  %v382_v23 = vld [vmem:[%s1765_s29 + $0x90] sm:$0xff] }
  0x60   : > { %v443_v24 = vld [vmem:[#allocation2 + $0x58] sm:$0xff]  ;;  %481 = vst [vmem:[#allocation2 + $0x60] sm:$0xff] %v455_v10  ;;  %482 = vst [vmem:[#allocation2 + $0x28] sm:$0xff] %v456_v11  ;;  %v459_v25 = vadd.f32 %v433_v54, %v407_v17  ;;  %v460_v26 = vadd.f32 %v434_v55, %v408_v18  ;;  %v461_v28 = vadd.f32 %v435_v56, %v409_v19  ;;  %v444_v32 = vld [vmem:[#allocation2 + $0xc8] sm:$0xff]  ;;  %v411_v34 = vsel %vm1785_vm0, %v376_v63, 0.0 }
  0x61   : > { %483 = vst [vmem:[#allocation2 + $0x40] sm:$0xff] %v457_v12  ;;  %484 = vst [vmem:[#allocation2 + $0x78] sm:$0xff] %v458_v13  ;;  %v462_v30 = vadd.f32 %v436_v58, %v410_v20  ;;  %v383_v31 = vld [vmem:[%s1765_s29 + $0x98] sm:$0xff]  ;;  %v384_v33 = vld [vmem:[%s1765_s29 + $0xa0] sm:$0xff]  ;;  %v412_v35 = vsel %vm1785_vm0, %v377_v0, 0.0  ;;  %v413_v36 = vsel %vm1785_vm0, %v378_v1, 0.0  ;;  %v463_v40 = vadd.f32 %v437_v6, %v411_v34 }
  0x62   : > { %v414_v37 = vsel %vm1785_vm0, %v379_v9, 0.0  ;;  %v445_v38 = vld [vmem:[#allocation2 + $0xa0] sm:$0xff]  ;;  %v385_v39 = vld [vmem:[%s1765_s29 + $0xa8] sm:$0xff]  ;;  %485 = vst [vmem:[#allocation2 + $0x80] sm:$0xff] %v459_v25  ;;  %486 = vst [vmem:[#allocation2 + $0xa8] sm:$0xff] %v460_v26  ;;  %v464_v41 = vadd.f32 %v438_v7, %v412_v35  ;;  %v465_v42 = vadd.f32 %v439_v8, %v413_v36  ;;  %v415_v48 = vsel %vm1785_vm0, %v380_v15, 0.0 }
  0x63   : > { %487 = vst [vmem:[#allocation2 + $0x50] sm:$0xff] %v461_v28  ;;  %488 = vst [vmem:[#allocation2 + $0x30] sm:$0xff] %v462_v30  ;;  %v466_v43 = vadd.f32 %v440_v14, %v414_v37  ;;  %v446_v44 = vld [vmem:[#allocation2 + $0x90] sm:$0xff]  ;;  %v387_v47 = vld [vmem:[%s1765_s29 + $0xb8] sm:$0xff]  ;;  %v416_v49 = vsel %vm1785_vm0, %v381_v16, 0.0  ;;  %v417_v50 = vsel %vm1785_vm0, %v382_v23, 0.0  ;;  %v467_v54 = vadd.f32 %v441_v21, %v415_v48 }
  0x64   : > { %v386_v45 = vld [vmem:[%s1765_s29 + $0xb0] sm:$0xff]  ;;  %v418_v51 = vsel %vm1785_vm0, %v383_v31, 0.0  ;;  %v447_v52 = vld [vmem:[#allocation2 + $0x98] sm:$0xff]  ;;  %489 = vst [vmem:[#allocation2 + $0x88] sm:$0xf] %v463_v40  ;;  %490 = vst [vmem:[#allocation2 + $0x70] sm:$0xff] %v464_v41  ;;  %v468_v55 = vadd.f32 %v442_v22, %v416_v49  ;;  %v469_v56 = vadd.f32 %v443_v24, %v417_v50 }
  0x65   : > { %v448_v53 = vld [vmem:[#allocation2 + $0x18] sm:$0xff]  ;;  %491 = vst [vmem:[#allocation2 + $0x8] sm:$0xff] %v465_v42  ;;  %492 = vst [vmem:[#allocation2 + $0x38] sm:$0xff] %v466_v43  ;;  %v470_v57 = vadd.f32 %v444_v32, %v418_v51  ;;  %v388_v58 = vld [vmem:[%s1765_s29 + $0xc0] sm:$0xff]  ;;  %v419_v61 = vsel %vm1785_vm0, %v384_v33, 0.0  ;;  %v420_v62 = vsel %vm1785_vm0, %v385_v39, 0.0 }
  0x66   : > { %v449_v59 = vld [vmem:[#allocation2 + $0xc0] sm:$0xff]  ;;  %v389_v60 = vld [vmem:[%s1765_s29 + $0xc8] sm:$0xf]  ;;  %v421_v63 = vsel %vm1785_vm0, %v386_v45, 0.0  ;;  %v422_v0 = vsel %vm1785_vm0, %v387_v47, 0.0  ;;  %493 = vst [vmem:[#allocation2 + $0x20] sm:$0xff] %v467_v54  ;;  %v471_v2 = vadd.f32 %v445_v38, %v419_v61  ;;  %v472_v3 = vadd.f32 %v446_v44, %v420_v62 }
  0x67   : > { %v450_v1 = vld [vmem:[#allocation2 + $0x68] sm:$0xf]  ;;  %494 = vst [vmem:[#allocation2 + $0xb8] sm:$0xff] %v468_v55  ;;  %495 = vst [vmem:[#allocation2 + $0x58] sm:$0xff] %v469_v56  ;;  %v473_v4 = vadd.f32 %v447_v52, %v421_v63  ;;  %v474_v5 = vadd.f32 %v448_v53, %v422_v0  ;;  %v423_v6 = vsel %vm1785_vm0, %v388_v58, 0.0  ;;  %v424_v7 = vsel %vm1785_vm0, %v389_v60, 0.0 }
  0x68   : > { %496 = vst [vmem:[#allocation2 + $0xc8] sm:$0xff] %v470_v57  ;;  %497 = vst [vmem:[#allocation2 + $0xa0] sm:$0xff] %v471_v2  ;;  %v475_v8 = vadd.f32 %v449_v59, %v423_v6  ;;  %v476_v9 = vadd.f32 %v450_v1, %v424_v7  ;;  %506 = sbr.rel (%p1414_p7) target bundleno = 536 (0x218), region = 82 }
  0x69   : > { %498 = vst [vmem:[#allocation2 + $0x90] sm:$0xff] %v472_v3  ;;  %499 = vst [vmem:[#allocation2 + $0x98] sm:$0xff] %v473_v4 }
  0x6a   : > { %500 = vst [vmem:[#allocation2 + $0x18] sm:$0xff] %v474_v5  ;;  %501 = vst [vmem:[#allocation2 + $0xc0] sm:$0xff] %v475_v8 }
  0x6b   : > { %502 = vst [vmem:[#allocation2 + $0x68] sm:$0xf] %v476_v9 }
  0x6d   : > { %v520_v10 = vld [vmem:[#allocation2 + $0x70] sm:$0xff]  ;;  %v521_v12 = vld [vmem:[#allocation2 + $0x8] sm:$0xff]  ;;  %v508_v13 = vld [vmem:[#allocation2] sm:$0xff]  ;;  %vm557_vm1 = vcmask 1043456   ;;  %vm823_vm2 = vcmask 130112   ;;  %vm830_vm3 = vcmask 195712  }
  0x6e   : > { %v507_v11 = vld [vmem:[#allocation2 + $0xb0] sm:$0xff]  ;;  %561 = vadd.xlane.f32.xlu1 %v520_v10  ;;  %v522_v46 = vld [vmem:[#allocation2 + $0x38] sm:$0xff]  ;;  %v523_v15 = vld [vmem:[#allocation2 + $0x20] sm:$0xff]  ;;  %vm837_vm4 = vcmask 261312   ;;  %vm844_vm5 = vcmask 326912   ;;  %vm851_vm6 = vcmask 392512  }
  0x6f   : > { %533 = vadd.xlane.f32.xlu0 %v507_v11  ;;  %v509_v14 = vld [vmem:[#allocation2 + $0x10] sm:$0xff]  ;;  %v510_v16 = vld [vmem:[#allocation2 + $0x48] sm:$0xff]  ;;  %v524_v17 = vld [vmem:[#allocation2 + $0xb8] sm:$0xff]  ;;  %vm858_vm7 = vcmask 458112   ;;  %vm865_vm8 = vcmask 523712   ;;  %vm872_vm9 = vcmask 589312  }
  0x70   : > { %v511_v18 = vld [vmem:[#allocation2 + $0x60] sm:$0xff]  ;;  %v525_v19 = vld [vmem:[#allocation2 + $0x58] sm:$0xff]  ;;  %v512_v20 = vld [vmem:[#allocation2 + $0x28] sm:$0xff]  ;;  %vm879_vm10 = vcmask 654912   ;;  %vm886_vm11 = vcmask 720512   ;;  %vm893_vm12 = vcmask 786112  }
  0x71   : > { %v526_v21 = vld [vmem:[#allocation2 + $0xc8] sm:$0xff]  ;;  %v513_v22 = vld [vmem:[#allocation2 + $0x40] sm:$0xff]  ;;  %v514_v24 = vld [vmem:[#allocation2 + $0x78] sm:$0xff]  ;;  %vm900_vm13 = vcmask 851712   ;;  %vm966_vm14 = vcmask 1041409   ;;  %vm968_vm15 = vcmask 818176  }
  0x72   : > { %563 = vadd.xlane.f32.xlu1 %v521_v12  ;;  %v527_v23 = vld [vmem:[#allocation2 + $0xa0] sm:$0xff]  ;;  %v528_v25 = vld [vmem:[#allocation2 + $0x90] sm:$0xff]  ;;  %v529_v28 = vld [vmem:[#allocation2 + $0x98] sm:$0xff] }
  0x73   : > { %535 = vadd.xlane.f32.xlu0 %v508_v13  ;;  %v515_v26 = vld [vmem:[#allocation2 + $0x80] sm:$0xff]  ;;  %v516_v30 = vld [vmem:[#allocation2 + $0xa8] sm:$0xff]  ;;  %v530_v31 = vld [vmem:[#allocation2 + $0x18] sm:$0xff] }
  0x74   : > { %v517_v32 = vld [vmem:[#allocation2 + $0x50] sm:$0xff]  ;;  %v739_v33 = vld [vmem:[#allocation7 + $0x308] sm:$0xf]  ;;  %v741_v34 = vld [vmem:[#allocation7 + $0x318] sm:$0xf] }
  0x75   : > { %v531_v35 = vld [vmem:[#allocation2 + $0xc0] sm:$0xff]  ;;  %1415 = vmatprep.subr.msk.mxu0 %vm557_vm1, %v739_v33  ;;  %1418 = vmatprep.subr.msk.mxu1 %vm557_vm1, %v741_v34  ;;  %v738_v36 = vld [vmem:[#allocation7 + $0x300] sm:$0xf]  ;;  %v731_v39 = vld [vmem:[#allocation7 + $0x2c8] sm:$0xff] }
  0x76   : > { %565 = vadd.xlane.f32.xlu1 %v522_v46  ;;  %v740_v37 = vld [vmem:[#allocation7 + $0x310] sm:$0xf]  ;;  %v518_v38 = vld [vmem:[#allocation2 + $0x30] sm:$0xff]  ;;  %v733_v40 = vld [vmem:[#allocation7 + $0x2d8] sm:$0xff]  ;;  %1416 = vmatpush1.msk.msra.mxu0 %vm557_vm1, %v738_v36 }
  0x77   : > { %537 = vadd.xlane.f32.xlu0 %v509_v14  ;;  %v532_v41 = vld [vmem:[#allocation2 + $0x68] sm:$0xf]  ;;  %1419 = vmatpush1.msk.msra.mxu1 %vm557_vm1, %v740_v37  ;;  %v730_v42 = vld [vmem:[#allocation7 + $0x2c0] sm:$0xff]  ;;  %v732_v43 = vld [vmem:[#allocation7 + $0x2d0] sm:$0xff] }
  0x78   : > { %v519_v44 = vld [vmem:[#allocation2 + $0x88] sm:$0xf]  ;;  %1003 = vmatprep.subr.mxu0 %v731_v39  ;;  %1074 = vmatprep.subr.mxu1 %v733_v40  ;;  %v723_v45 = vld [vmem:[#allocation7 + $0x288] sm:$0xff]  ;;  %v722_v48 = vld [vmem:[#allocation7 + $0x280] sm:$0xff]  ;;  %v585_v52 = vsel %vm557_vm1, %v532_v41, 0.0 }
  0x79   : > { %v725_v47 = vld [vmem:[#allocation7 + $0x298] sm:$0xff]  ;;  %1004 = vmatpush1.msra.mxu0 %v730_v42  ;;  %1075 = vmatpush1.msra.mxu1 %v732_v43  ;;  %v724_v49 = vld [vmem:[#allocation7 + $0x290] sm:$0xff]  ;;  %v715_v50 = vld [vmem:[#allocation7 + $0x248] sm:$0xff]  ;;  %v558_v53 = vsel %vm557_vm1, %v519_v44, 0.0  ;;  %v1871_v42 = vshrl.u32 %v390_v27, 7 }
  0x7a   : > { %567 = vadd.xlane.f32.xlu1 %v523_v15  ;;  %v717_v51 = vld [vmem:[#allocation7 + $0x258] sm:$0xff]  ;;  %1005 = vmatprep.subr.mxu0 %v723_v45  ;;  %v714_v54 = vld [vmem:[#allocation7 + $0x240] sm:$0xff]  ;;  %v716_v55 = vld [vmem:[#allocation7 + $0x250] sm:$0xff]  ;;  %v818_v45 = vadd.s32 4294967288, %v1775_v29 }
  0x7b   : > { %539 = vadd.xlane.f32.xlu0 %v510_v16  ;;  %1076 = vmatprep.subr.mxu1 %v725_v47  ;;  %v707_v56 = vld [vmem:[#allocation7 + $0x208] sm:$0xff]  ;;  %v709_v57 = vld [vmem:[#allocation7 + $0x218] sm:$0xff]  ;;  %v706_v58 = vld [vmem:[#allocation7 + $0x200] sm:$0xff]  ;;  %v825_v47 = vadd.s32 4294967280, %v1775_v29  ;;  %v816_v27 = vsub.s32 %v1775_v29, %v1871_v42 }
  0x7c   : > { %1006 = vmatpush1.msra.mxu0 %v722_v48  ;;  %1077 = vmatpush1.msra.mxu1 %v724_v49  ;;  %v708_v59 = vld [vmem:[#allocation7 + $0x210] sm:$0xff]  ;;  %v699_v60 = vld [vmem:[#allocation7 + $0x1c8] sm:$0xff]  ;;  %v701_v61 = vld [vmem:[#allocation7 + $0x1d8] sm:$0xff]  ;;  %v1875_v48 = vstv %s588_s24  ;;  %v832_v49 = vadd.s32 4294967272, %v1775_v29 }
  0x7d   : > { %1007 = vmatprep.subr.mxu0 %v715_v50  ;;  %1078 = vmatprep.subr.mxu1 %v717_v51  ;;  %v698_v62 = vld [vmem:[#allocation7 + $0x1c0] sm:$0xff]  ;;  %v700_v63 = vld [vmem:[#allocation7 + $0x1d0] sm:$0xff]  ;;  %v691_v0 = vld [vmem:[#allocation7 + $0x188] sm:$0xff]  ;;  %v839_v50 = vadd.s32 4294967264, %v1775_v29  ;;  %v846_v51 = vadd.s32 4294967256, %v1775_v29 }
  0x7e   : > { %569 = vadd.xlane.f32.xlu1 %v524_v17  ;;  %1008 = vmatpush1.msra.mxu0 %v714_v54  ;;  %v693_v1 = vld [vmem:[#allocation7 + $0x198] sm:$0xff]  ;;  %v690_v2 = vld [vmem:[#allocation7 + $0x180] sm:$0xff]  ;;  %v692_v3 = vld [vmem:[#allocation7 + $0x190] sm:$0xff] }
  0x7f   : > { %541 = vadd.xlane.f32.xlu0 %v511_v18  ;;  %1079 = vmatpush1.msra.mxu1 %v716_v55  ;;  %v683_v4 = vld [vmem:[#allocation7 + $0x148] sm:$0xff]  ;;  %v685_v5 = vld [vmem:[#allocation7 + $0x158] sm:$0xff]  ;;  %v682_v6 = vld [vmem:[#allocation7 + $0x140] sm:$0xff] }
  0x80   : > { %1009 = vmatprep.subr.mxu0 %v707_v56  ;;  %1080 = vmatprep.subr.mxu1 %v709_v57  ;;  %v684_v7 = vld [vmem:[#allocation7 + $0x150] sm:$0xff]  ;;  %v675_v8 = vld [vmem:[#allocation7 + $0x108] sm:$0xff]  ;;  %v677_v9 = vld [vmem:[#allocation7 + $0x118] sm:$0xff]  ;;  %v821_v57 = vsub.s32 %v818_v45, %v1871_v42 }
  0x81   : > { %1010 = vmatpush1.msra.mxu0 %v706_v58  ;;  %1081 = vmatpush1.msra.mxu1 %v708_v59  ;;  %v674_v10 = vld [vmem:[#allocation7 + $0x100] sm:$0xff]  ;;  %v676_v11 = vld [vmem:[#allocation7 + $0x110] sm:$0xff]  ;;  %v667_v12 = vld [vmem:[#allocation7 + $0xc8] sm:$0xff]  ;;  %v828_v58 = vsub.s32 %v825_v47, %v1871_v42 }
  0x82   : > { %571 = vadd.xlane.f32.xlu1 %v525_v19  ;;  %1011 = vmatprep.subr.mxu0 %v699_v60  ;;  %v669_v13 = vld [vmem:[#allocation7 + $0xd8] sm:$0xff]  ;;  %v666_v46 = vld [vmem:[#allocation7 + $0xc0] sm:$0xff]  ;;  %v668_v14 = vld [vmem:[#allocation7 + $0xd0] sm:$0xff] }
  0x83   : > { %543 = vadd.xlane.f32.xlu0 %v512_v20  ;;  %1082 = vmatprep.subr.mxu1 %v701_v61  ;;  %v659_v15 = vld [vmem:[#allocation7 + $0x88] sm:$0xff]  ;;  %v661_v16 = vld [vmem:[#allocation7 + $0x98] sm:$0xff]  ;;  %v658_v17 = vld [vmem:[#allocation7 + $0x80] sm:$0xff] }
  0x84   : > { %1012 = vmatpush1.msra.mxu0 %v698_v62  ;;  %1083 = vmatpush1.msra.mxu1 %v700_v63  ;;  %v660_v18 = vld [vmem:[#allocation7 + $0x90] sm:$0xff]  ;;  %v651_v19 = vld [vmem:[#allocation7 + $0x48] sm:$0xff]  ;;  %v653_v20 = vld [vmem:[#allocation7 + $0x58] sm:$0xff]  ;;  %v860_v63 = vadd.s32 4294967240, %v1775_v29 }
  0x85   : > { %1013 = vmatprep.subr.mxu0 %v691_v0  ;;  %1084 = vmatprep.subr.mxu1 %v693_v1  ;;  %v867_v0 = vadd.s32 4294967232, %v1775_v29  ;;  %v835_v1 = vsub.s32 %v832_v49, %v1871_v42 }
  0x86   : > { %573 = vadd.xlane.f32.xlu1 %v526_v21  ;;  %1014 = vmatpush1.msra.mxu0 %v690_v2  ;;  %v650_v21 = vld [vmem:[#allocation7 + $0x40] sm:$0xff]  ;;  %v842_v2 = vsub.s32 %v839_v50, %v1871_v42 }
  0x87   : > { %545 = vadd.xlane.f32.xlu0 %v513_v22  ;;  %1085 = vmatpush1.msra.mxu1 %v692_v3  ;;  %v652_v22 = vld [vmem:[#allocation7 + $0x50] sm:$0xff]  ;;  %v1896_v3 = vsub.s32 %v846_v51, %v1871_v42 }
  0x88   : > { %1015 = vmatprep.subr.mxu0 %v683_v4  ;;  %1086 = vmatprep.subr.mxu1 %v685_v5 }
  0x89   : > { %1016 = vmatpush1.msra.mxu0 %v682_v6  ;;  %1087 = vmatpush1.msra.mxu1 %v684_v7 }
  0x8a   : > { %575 = vadd.xlane.f32.xlu1 %v527_v23  ;;  %1017 = vmatprep.subr.mxu0 %v675_v8  ;;  %v643_v23 = vld [vmem:[#allocation7 + $0x8] sm:$0xff] }
  0x8b   : > { %547 = vadd.xlane.f32.xlu0 %v514_v24  ;;  %1088 = vmatprep.subr.mxu1 %v677_v9  ;;  %v645_v24 = vld [vmem:[#allocation7 + $0x18] sm:$0xff]  ;;  %v874_v9 = vadd.s32 4294967224, %v1775_v29 }
  0x8c   : > { %1018 = vmatpush1.msra.mxu0 %v674_v10  ;;  %1089 = vmatpush1.msra.mxu1 %v676_v11  ;;  %v881_v10 = vadd.s32 4294967216, %v1775_v29 }
  0x8d   : > { %1019 = vmatprep.subr.mxu0 %v667_v12  ;;  %1090 = vmatprep.subr.mxu1 %v669_v13 }
  0x8e   : > { %577 = vadd.xlane.f32.xlu1 %v528_v25  ;;  %1020 = vmatpush1.msra.mxu0 %v666_v46  ;;  %v642_v25 = vld [vmem:[#allocation7] sm:$0xff] }
  0x8f   : > { %549 = vadd.xlane.f32.xlu0 %v515_v26  ;;  %1091 = vmatpush1.msra.mxu1 %v668_v14  ;;  %v644_v26 = vld [vmem:[#allocation7 + $0x10] sm:$0xff] }
  0x90   : > { %1021 = vmatprep.subr.mxu0 %v659_v15  ;;  %1092 = vmatprep.subr.mxu1 %v661_v16  ;;  %v1906_v16 = vsub.s32 %v860_v63, %v1871_v42 }
  0x91   : > { %1022 = vmatpush1.msra.mxu0 %v658_v17  ;;  %1093 = vmatpush1.msra.mxu1 %v660_v18  ;;  %v1909_v17 = vsub.s32 %v867_v0, %v1871_v42 }
  0x92   : > { %579 = vadd.xlane.f32.xlu1 %v529_v28  ;;  %1023 = vmatprep.subr.mxu0 %v651_v19  ;;  %v743_v28 = vld [vmem:[#allocation7 + $0x328] sm:$0xf] }
  0x93   : > { %551 = vadd.xlane.f32.xlu0 %v516_v30  ;;  %1094 = vmatprep.subr.mxu1 %v653_v20  ;;  %v745_v30 = vld [vmem:[#allocation7 + $0x338] sm:$0xf]  ;;  %v888_v20 = vadd.s32 4294967208, %v1775_v29 }
  0x94   : > { %1024 = vmatpush1.msra.mxu0 %v650_v21  ;;  %1095 = vmatpush1.msra.mxu1 %v652_v22  ;;  %v895_v21 = vadd.s32 4294967200, %v1775_v29 }
  0x95   : > { %1025 = vmatprep.subr.mxu0 %v643_v23  ;;  %1096 = vmatprep.subr.mxu1 %v645_v24 }
  0x96   : > { %581 = vadd.xlane.f32.xlu1 %v530_v31  ;;  %1026 = vmatpush1.msra.mxu0 %v642_v25  ;;  %v1598_v31 = vmov 0.0  }
  0x97   : > { %553 = vadd.xlane.f32.xlu0 %v517_v32  ;;  %1097 = vmatpush1.msra.mxu1 %v644_v26  ;;  %v1916_v26 = vsub.s32 %v874_v9, %v1871_v42 }
  0x98   : > { %1059 = vmatprep.mubr.f32.mxu0 %v1598_v31  ;;  %1130 = vmatprep.mubr.f32.mxu1 %v1598_v31 }
  0x99   : > { %1421 = vmatprep.subr.msk.mxu0 %vm557_vm1, %v743_v28  ;;  %1424 = vmatprep.subr.msk.mxu1 %vm557_vm1, %v745_v30  ;;  %v1919_v28 = vsub.s32 %v881_v10, %v1871_v42 }
  0x9a   : > { %583 = vadd.xlane.f32.xlu1 %v531_v35 }
  0x9b   : > { %555 = vadd.xlane.f32.xlu0 %v518_v38 }
  0x9e   : > { %586 = vadd.xlane.f32.xlu1 %v585_v52  ;;  %v853_v52 = vadd.s32 4294967248, %v1775_v29 }
  0x9f   : > { %559 = vadd.xlane.f32.xlu0 %v558_v53 }
  0xa0   : > { %v1899_v4 = vsub.s32 %v853_v52, %v1871_v42 }
  0xf7   : > { %v562_v32 = vpop.xlane.xlu1 %561 }
  0xf8   : > { %v534_v33 = vpop.xlane.xlu0 %533  ;;  %v603_v61 = vmul.f32 %v1875_v48, %v562_v32 }
  0xf9   : > { %v590_v62 = vmul.f32 %v1875_v48, %v534_v33 }
  0xfa   : > { %v629_v14 = vmax.f32 %v603_v61, 0.0 }
  0xfb   : > { %v564_v34 = vpop.xlane.xlu1 %563  ;;  %v616_v15 = vmax.f32 %v590_v62, 0.0 }
  0xfc   : > { %v536_v35 = vpop.xlane.xlu0 %535  ;;  %v604_v53 = vmul.f32 %v1875_v48, %v564_v34 }
  0xfd   : > { %v591_v54 = vmul.f32 %v1875_v48, %v536_v35  ;;  %v905_v35 = vrot.slane %v629_v14, %v816_v27 }
  0xfe   : > { %v630_v5 = vmax.f32 %v604_v53, 0.0 }
  0xff   : > { %v566_v36 = vpop.xlane.xlu1 %565  ;;  %v617_v6 = vmax.f32 %v591_v54, 0.0 }
 0x100   : > { %v538_v37 = vpop.xlane.xlu0 %537  ;;  %v605_v59 = vmul.f32 %v1875_v48, %v566_v36  ;;  %v909_v22 = vrot.slane %v630_v5, %v821_v57  ;;  %v817_v36 = vrot.slane %v616_v15, %v816_v27 }
 0x101   : > { %v592_v60 = vmul.f32 %v1875_v48, %v538_v37  ;;  %v822_v23 = vrot.slane %v617_v6, %v821_v57 }
 0x102   : > { %v631_v11 = vmax.f32 %v605_v59, 0.0  ;;  %v910_v45 = vsel %vm823_vm2, %v909_v22, %v905_v35 }
 0x103   : > { %v568_v38 = vpop.xlane.xlu1 %567  ;;  %v618_v12 = vmax.f32 %v592_v60, 0.0  ;;  %v824_v47 = vsel %vm823_vm2, %v822_v23, %v817_v36 }
 0x104   : > { %v540_v39 = vpop.xlane.xlu0 %539  ;;  %v606_v13 = vmul.f32 %v1875_v48, %v568_v38  ;;  %v914_v30 = vrot.slane %v631_v11, %v828_v58 }
 0x105   : > { %v593_v46 = vmul.f32 %v1875_v48, %v540_v39  ;;  %v829_v32 = vrot.slane %v618_v12, %v828_v58 }
 0x106   : > { %v632_v33 = vmax.f32 %v606_v13, 0.0 }
 0x107   : > { %v570_v40 = vpop.xlane.xlu1 %569  ;;  %v619_v34 = vmax.f32 %v593_v46, 0.0  ;;  %v831_v52 = vsel %vm830_vm3, %v829_v32, %v824_v47 }
 0x108   : > { %v542_v41 = vpop.xlane.xlu0 %541  ;;  %v607_v18 = vmul.f32 %v1875_v48, %v570_v40  ;;  %v1924_v40 = vsub.s32 %v888_v20, %v1871_v42  ;;  %v919_v27 = vrot.slane %v632_v33, %v835_v1 }
 0x109   : > { %v594_v19 = vmul.f32 %v1875_v48, %v542_v41  ;;  %v1927_v41 = vsub.s32 %v895_v21, %v1871_v42  ;;  %v836_v53 = vrot.slane %v619_v34, %v835_v1 }
 0x10a   : > { %v633_v38 = vmax.f32 %v607_v18, 0.0 }
 0x10b   : > { %v572_v43 = vpop.xlane.xlu1 %571  ;;  %v620_v39 = vmax.f32 %v594_v19, 0.0 }
 0x10c   : > { %v544_v44 = vpop.xlane.xlu0 %543  ;;  %v608_v37 = vmul.f32 %v1875_v48, %v572_v43  ;;  %v924_v60 = vrot.slane %v633_v38, %v842_v2 }
 0x10d   : > { %v595_v29 = vmul.f32 %v1875_v48, %v544_v44  ;;  %v915_v44 = vsel %vm830_vm3, %v914_v30, %v910_v45  ;;  %v843_v61 = vrot.slane %v620_v39, %v842_v2 }
 0x10e   : > { %v634_v54 = vmax.f32 %v608_v37, 0.0 }
 0x10f   : > { %v574_v55 = vpop.xlane.xlu1 %573  ;;  %v621_v57 = vmax.f32 %v595_v29, 0.0 }
 0x110   : > { %v546_v56 = vpop.xlane.xlu0 %545  ;;  %v609_v49 = vmul.f32 %v1875_v48, %v574_v55  ;;  %v929_v10 = vrot.slane %v634_v54, %v1896_v3 }
 0x111   : > { %v596_v50 = vmul.f32 %v1875_v48, %v546_v56  ;;  %v850_v11 = vrot.slane %v621_v57, %v1896_v3 }
 0x112   : > { %v635_v62 = vmax.f32 %v609_v49, 0.0 }
 0x113   : > { %v576_v7 = vpop.xlane.xlu1 %575  ;;  %v622_v63 = vmax.f32 %v596_v50, 0.0 }
 0x114   : > { %v548_v8 = vpop.xlane.xlu0 %547  ;;  %v610_v58 = vmul.f32 %v1875_v48, %v576_v7  ;;  %v920_v7 = vsel %vm837_vm4, %v919_v27, %v915_v44  ;;  %v934_v19 = vrot.slane %v635_v62, %v1899_v4 }
 0x115   : > { %v597_v59 = vmul.f32 %v1875_v48, %v548_v8  ;;  %v838_v8 = vsel %vm837_vm4, %v836_v53, %v831_v52  ;;  %v925_v46 = vsel %vm844_vm5, %v924_v60, %v920_v7  ;;  %v857_v20 = vrot.slane %v622_v63, %v1899_v4  ;;  %v735_v7 = vld [vmem:[#allocation7 + $0x2e8] sm:$0xff] }
 0x116   : > { %v636_v12 = vmax.f32 %v610_v58, 0.0  ;;  %v845_v14 = vsel %vm844_vm5, %v843_v61, %v838_v8  ;;  %v930_v33 = vsel %vm851_vm6, %v929_v10, %v925_v46  ;;  %v737_v8 = vld [vmem:[#allocation7 + $0x2f8] sm:$0xff] }
 0x117   : > { %v578_v24 = vpop.xlane.xlu1 %577  ;;  %v623_v13 = vmax.f32 %v597_v59, 0.0  ;;  %v852_v34 = vsel %vm851_vm6, %v850_v11, %v845_v14  ;;  %v935_v39 = vsel %vm858_vm7, %v934_v19, %v930_v33  ;;  %v729_v10 = vld [vmem:[#allocation7 + $0x2b8] sm:$0xff]  ;;  %v726_v11 = vld [vmem:[#allocation7 + $0x2a0] sm:$0xff]  ;;  %v696_v33 = vld [vmem:[#allocation7 + $0x1b0] sm:$0xff] }
 0x118   : > { %v550_v25 = vpop.xlane.xlu0 %549  ;;  %v611_v55 = vmul.f32 %v1875_v48, %v578_v24  ;;  %v939_v35 = vrot.slane %v636_v12, %v1906_v16  ;;  %v859_v45 = vsel %vm858_vm7, %v857_v20, %v852_v34  ;;  %v728_v12 = vld [vmem:[#allocation7 + $0x2b0] sm:$0xff]  ;;  %v721_v46 = vld [vmem:[#allocation7 + $0x278] sm:$0xff]  ;;  %v718_v14 = vld [vmem:[#allocation7 + $0x260] sm:$0xff] }
 0x119   : > { %v598_v56 = vmul.f32 %v1875_v48, %v550_v25  ;;  %v864_v36 = vrot.slane %v623_v13, %v1906_v16  ;;  %v719_v13 = vld [vmem:[#allocation7 + $0x268] sm:$0xff]  ;;  %v713_v19 = vld [vmem:[#allocation7 + $0x238] sm:$0xff]  ;;  %v710_v20 = vld [vmem:[#allocation7 + $0x220] sm:$0xff] }
 0x11a   : > { %v637_v15 = vmax.f32 %v611_v55, 0.0  ;;  %v940_v52 = vsel %vm865_vm8, %v939_v35, %v935_v39  ;;  %v687_v34 = vld [vmem:[#allocation7 + $0x168] sm:$0xff]  ;;  %v689_v35 = vld [vmem:[#allocation7 + $0x178] sm:$0xff]  ;;  %v680_v39 = vld [vmem:[#allocation7 + $0x130] sm:$0xff] }
 0x11b   : > { %v580_v43 = vpop.xlane.xlu1 %579  ;;  %v624_v18 = vmax.f32 %v598_v56, 0.0  ;;  %v866_v27 = vsel %vm865_vm8, %v864_v36, %v859_v45  ;;  %v686_v36 = vld [vmem:[#allocation7 + $0x160] sm:$0xff]  ;;  %v671_v45 = vld [vmem:[#allocation7 + $0xe8] sm:$0xff] }
 0x11c   : > { %v552_v51 = vpop.xlane.xlu0 %551  ;;  %v612_v0 = vmul.f32 %v1875_v48, %v580_v43  ;;  %v944_v4 = vrot.slane %v637_v15, %v1909_v17  ;;  %v720_v15 = vld [vmem:[#allocation7 + $0x270] sm:$0xff] }
 0x11d   : > { %v599_v1 = vmul.f32 %v1875_v48, %v552_v51  ;;  %v871_v37 = vrot.slane %v624_v18, %v1909_v17  ;;  %v711_v18 = vld [vmem:[#allocation7 + $0x228] sm:$0xff] }
 0x11e   : > { %v638_v21 = vmax.f32 %v612_v0, 0.0 }
 0x11f   : > { %v582_v5 = vpop.xlane.xlu1 %581  ;;  %v625_v22 = vmax.f32 %v599_v1, 0.0  ;;  %v873_v57 = vsel %vm872_vm9, %v871_v37, %v866_v27  ;;  %v742_v1 = vld [vmem:[#allocation7 + $0x320] sm:$0xf]  ;;  %v679_v37 = vld [vmem:[#allocation7 + $0x128] sm:$0xff] }
 0x120   : > { %v554_v6 = vpop.xlane.xlu0 %553  ;;  %v613_v2 = vmul.f32 %v1875_v48, %v582_v5  ;;  %v949_v47 = vrot.slane %v638_v21, %v1916_v26  ;;  %v744_v5 = vld [vmem:[#allocation7 + $0x330] sm:$0xf]  ;;  %v654_v27 = vld [vmem:[#allocation7 + $0x60] sm:$0xff] }
 0x121   : > { %v600_v9 = vmul.f32 %v1875_v48, %v554_v6  ;;  %v878_v49 = vrot.slane %v625_v22, %v1916_v26  ;;  %v945_v26 = vsel %vm872_vm9, %v944_v4, %v940_v52  ;;  %v712_v21 = vld [vmem:[#allocation7 + $0x230] sm:$0xff]  ;;  %v703_v22 = vld [vmem:[#allocation7 + $0x1e8] sm:$0xff]  ;;  %v657_v52 = vld [vmem:[#allocation7 + $0x78] sm:$0xff] }
 0x122   : > { %v639_v25 = vmax.f32 %v613_v2, 0.0  ;;  %v736_v2 = vld [vmem:[#allocation7 + $0x2f0] sm:$0xff] }
 0x123   : > { %v584_v23 = vpop.xlane.xlu1 %583  ;;  %v626_v3 = vmax.f32 %v600_v9, 0.0  ;;  %v880_v60 = vsel %vm879_vm10, %v878_v49, %v873_v57  ;;  %v727_v9 = vld [vmem:[#allocation7 + $0x2a8] sm:$0xff]  ;;  %v688_v4 = vld [vmem:[#allocation7 + $0x170] sm:$0xff]  ;;  %v670_v49 = vld [vmem:[#allocation7 + $0xe0] sm:$0xff] }
 0x124   : > { %v556_v24 = vpop.xlane.xlu0 %555  ;;  %v614_v30 = vmul.f32 %v1875_v48, %v584_v23  ;;  %v954_v51 = vrot.slane %v639_v25, %v1919_v28  ;;  %v705_v23 = vld [vmem:[#allocation7 + $0x1f8] sm:$0xff]  ;;  %v704_v25 = vld [vmem:[#allocation7 + $0x1f0] sm:$0xff]  ;;  %v646_v57 = vld [vmem:[#allocation7 + $0x20] sm:$0xff] }
 0x125   : > { %v601_v32 = vmul.f32 %v1875_v48, %v556_v24  ;;  %v885_v16 = vrot.slane %v626_v3, %v1919_v28  ;;  %v950_v28 = vsel %vm879_vm10, %v949_v47, %v945_v26  ;;  %v702_v24 = vld [vmem:[#allocation7 + $0x1e0] sm:$0xff]  ;;  %v695_v3 = vld [vmem:[#allocation7 + $0x1a8] sm:$0xff]  ;;  %v673_v47 = vld [vmem:[#allocation7 + $0xf8] sm:$0xff] }
 0x126   : > { %v640_v29 = vmax.f32 %v614_v30, 0.0  ;;  %v697_v30 = vld [vmem:[#allocation7 + $0x1b8] sm:$0xff] }
 0x127   : > { %v627_v38 = vmax.f32 %v601_v32, 0.0  ;;  %v587_v50 = vpop.xlane.xlu1 %586  ;;  %v887_v61 = vsel %vm886_vm11, %v885_v16, %v880_v60  ;;  %v694_v32 = vld [vmem:[#allocation7 + $0x1a0] sm:$0xff]  ;;  %v649_v26 = vld [vmem:[#allocation7 + $0x38] sm:$0xff]  ;;  %v750_v60 = vsub.s32 0, %v1871_v42 }
 0x128   : > { %v560_v43 = vpop.xlane.xlu0 %559  ;;  %v615_v44 = vmul.f32 %v1875_v48, %v587_v50  ;;  %v959_v53 = vrot.slane %v640_v29, %v1924_v40  ;;  %v681_v29 = vld [vmem:[#allocation7 + $0x138] sm:$0xff]  ;;  %v672_v50 = vld [vmem:[#allocation7 + $0xf0] sm:$0xff]  ;;  %v662_v16 = vld [vmem:[#allocation7 + $0xa0] sm:$0xff] }
 0x129   : > { %v602_v17 = vmul.f32 %v1875_v48, %v560_v43  ;;  %v892_v54 = vrot.slane %v627_v38, %v1924_v40  ;;  %v955_v48 = vsel %vm886_vm11, %v954_v51, %v950_v28  ;;  %v678_v38 = vld [vmem:[#allocation7 + $0x120] sm:$0xff]  ;;  %v663_v43 = vld [vmem:[#allocation7 + $0xa8] sm:$0xff]  ;;  %v665_v51 = vld [vmem:[#allocation7 + $0xb8] sm:$0xff] }
 0x12a   : > { %v641_v58 = vmax.f32 %v615_v44, 0.0  ;;  %v960_v56 = vsel %vm893_vm12, %v959_v53, %v955_v48  ;;  %v664_v44 = vld [vmem:[#allocation7 + $0xb0] sm:$0xff]  ;;  %v758_v48 = vsub.s32 2, %v1871_v42 }
 0x12b   : > { %v628_v59 = vmax.f32 %v602_v17, 0.0  ;;  %v894_v62 = vsel %vm893_vm12, %v892_v54, %v887_v61  ;;  %v655_v17 = vld [vmem:[#allocation7 + $0x68] sm:$0xff]  ;;  %v656_v53 = vld [vmem:[#allocation7 + $0x70] sm:$0xff]  ;;  %v754_v61 = vsub.s32 1, %v1871_v42 }
 0x12c   : > { %v964_v55 = vrot.slane %v641_v58, %v1927_v41  ;;  %v647_v54 = vld [vmem:[#allocation7 + $0x28] sm:$0xff]  ;;  %v648_v58 = vld [vmem:[#allocation7 + $0x30] sm:$0xff] }
 0x12d   : > { %v899_v40 = vrot.slane %v628_v59, %v1927_v41  ;;  %v734_v41 = vld [vmem:[#allocation7 + $0x2e0] sm:$0xff]  ;;  %v1599_v59 = vmov 1983009808  }
 0x12e   : > { %v965_v0 = vsel %vm900_vm13, %v964_v55, %v960_v56  ;;  %v1290_v28 = vunpack.c.l.s4 %v1599_v59  ;;  %v762_v55 = vsub.s32 3, %v1871_v42 }
 0x12f   : > { %v901_v63 = vsel %vm900_vm13, %v899_v40, %v894_v62 }
 0x130   : > { %v1981_v6 = vsel %vm966_vm14, %v965_v0, %v901_v63  ;;  %v1291_v40 = vunpack.c.0.s8 %v1290_v28 }
 0x131   : > { %1417 = vmatmul.mubr.msk.f32.vlgmr.msra.gmra.mxu0 %vm968_vm15, %v1981_v6  ;;  %1420 = vmatmul.mubr.msk.f32.vlgmr.msra.gmra.mxu1 %vm968_vm15, %v1981_v6 }
 0x132   : > { %1422 = vmatpush1.msk.msra.mxu0 %vm557_vm1, %v742_v1  ;;  %1425 = vmatpush1.msk.msra.mxu1 %vm557_vm1, %v744_v5 }
 0x133   : > { %1145 = vmatprep.subr.mxu0 %v735_v7  ;;  %1216 = vmatprep.subr.mxu1 %v737_v8  ;;  %v1294_v7 = vsub.s32 %v1291_v40, %v1871_v42 }
 0x134   : > { %1146 = vmatpush1.msra.mxu0 %v734_v41  ;;  %1217 = vmatpush1.msra.mxu1 %v736_v2 }
 0x135   : > { %1147 = vmatprep.subr.mxu0 %v727_v9  ;;  %1218 = vmatprep.subr.mxu1 %v729_v10 }
 0x136   : > { %1148 = vmatpush1.msra.mxu0 %v726_v11  ;;  %1219 = vmatpush1.msra.mxu1 %v728_v12 }
 0x137   : > { %1149 = vmatprep.subr.mxu0 %v719_v13  ;;  %1220 = vmatprep.subr.mxu1 %v721_v46 }
 0x138   : > { %1150 = vmatpush1.msra.mxu0 %v718_v14  ;;  %1221 = vmatpush1.msra.mxu1 %v720_v15  ;;  %v766_v15 = vsub.s32 4, %v1871_v42 }
 0x139   : > { %1151 = vmatprep.subr.mxu0 %v711_v18  ;;  %1222 = vmatprep.subr.mxu1 %v713_v19  ;;  %v774_v18 = vsub.s32 6, %v1871_v42  ;;  %v770_v19 = vsub.s32 5, %v1871_v42 }
 0x13a   : > { %1152 = vmatpush1.msra.mxu0 %v710_v20  ;;  %1223 = vmatpush1.msra.mxu1 %v712_v21  ;;  %v778_v20 = vsub.s32 7, %v1871_v42 }
 0x13b   : > { %1153 = vmatprep.subr.mxu0 %v703_v22  ;;  %1224 = vmatprep.subr.mxu1 %v705_v23 }
 0x13c   : > { %1154 = vmatpush1.msra.mxu0 %v702_v24  ;;  %1225 = vmatpush1.msra.mxu1 %v704_v25 }
 0x13d   : > { %1155 = vmatprep.subr.mxu0 %v695_v3  ;;  %1226 = vmatprep.subr.mxu1 %v697_v30 }
 0x13e   : > { %1156 = vmatpush1.msra.mxu0 %v694_v32  ;;  %1227 = vmatpush1.msra.mxu1 %v696_v33 }
 0x13f   : > { %1157 = vmatprep.subr.mxu0 %v687_v34  ;;  %1228 = vmatprep.subr.mxu1 %v689_v35 }
 0x140   : > { %1158 = vmatpush1.msra.mxu0 %v686_v36  ;;  %1229 = vmatpush1.msra.mxu1 %v688_v4 }
 0x141   : > { %1159 = vmatprep.subr.mxu0 %v679_v37  ;;  %1230 = vmatprep.subr.mxu1 %v681_v29 }
 0x142   : > { %1160 = vmatpush1.msra.mxu0 %v678_v38  ;;  %1231 = vmatpush1.msra.mxu1 %v680_v39 }
 0x143   : > { %1161 = vmatprep.subr.mxu0 %v671_v45  ;;  %1232 = vmatprep.subr.mxu1 %v673_v47 }
 0x144   : > { %1162 = vmatpush1.msra.mxu0 %v670_v49  ;;  %1233 = vmatpush1.msra.mxu1 %v672_v50 }
 0x145   : > { %1163 = vmatprep.subr.mxu0 %v663_v43  ;;  %1234 = vmatprep.subr.mxu1 %v665_v51 }
 0x146   : > { %1164 = vmatpush1.msra.mxu0 %v662_v16  ;;  %1235 = vmatpush1.msra.mxu1 %v664_v44 }
 0x147   : > { %1165 = vmatprep.subr.mxu0 %v655_v17  ;;  %1236 = vmatprep.subr.mxu1 %v657_v52 }
 0x148   : > { %1166 = vmatpush1.msra.mxu0 %v654_v27  ;;  %1237 = vmatpush1.msra.mxu1 %v656_v53 }
 0x149   : > { %1167 = vmatprep.subr.mxu0 %v647_v54  ;;  %1238 = vmatprep.subr.mxu1 %v649_v26 }
 0x14a   : > { %1168 = vmatpush1.msra.mxu0 %v646_v57  ;;  %1201 = vmatprep.mubr.f32.mxu0 %v1598_v31 }
 0x14b   : > { %1239 = vmatpush1.msra.mxu1 %v648_v58  ;;  %1272 = vmatprep.mubr.f32.mxu1 %v1598_v31  ;;  %v746_v31 = vld [vmem:[%s2043_s4] sm:$0xff] }
 0x14c   : > { %1423 = vmatmul.mubr.msk.f32.vlgmr.msra.gmra.mxu0 %vm968_vm15, %v1981_v6  ;;  %1426 = vmatmul.mubr.msk.f32.vlgmr.msra.gmra.mxu1 %vm968_vm15, %v1981_v6  ;;  %v751_v56 = vrot.slane %v746_v31, %v750_v60  ;;  %v759_v62 = vrot.slane %v746_v31, %v758_v48  ;;  %v755_v63 = vrot.slane %v746_v31, %v754_v61 }
 0x14d   : > { %v763_v0 = vrot.slane %v746_v31, %v762_v55  ;;  %v767_v21 = vrot.slane %v746_v31, %v766_v15  ;;  %v775_v22 = vrot.slane %v746_v31, %v774_v18  ;;  %v771_v23 = vrot.slane %v746_v31, %v770_v19 }
 0x14e   : > { %v779_v24 = vrot.slane %v746_v31, %v778_v20 }
 0x1f1   : > { %v1061_v1 = vpop.f32.mrf.mxu0  ;;  %v1132_v5 = vpop.f32.mrf.mxu1 }
 0x1f2   : > { %v1062_v41 = vadd.f32 %v1061_v1, %v751_v56  ;;  %v1133_v2 = vadd.f32 %v1132_v5, %v759_v62 }
 0x1f3   : > { %v1063_v6 = vpop.f32.mrf.mxu0  ;;  %v1134_v8 = vpop.f32.mrf.mxu1 }
 0x1f4   : > { %v1064_v9 = vadd.f32 %v1063_v6, %v755_v63  ;;  %v1135_v10 = vadd.f32 %v1134_v8, %v763_v0 }
 0x1f6   : > { %v1287_v11 = vcombine.low %v1062_v41, %v1064_v9  ;;  %v1288_v12 = vcombine.low %v1133_v2, %v1135_v10 }
 0x1f8   : > { %v1295_v13 = vrot.slane %v1287_v11, %v1294_v7  ;;  %v1302_v46 = vrot.slane %v1288_v12, %v1294_v7 }
 0x1fa   : > { %v1303_v14 = vcombine.low %v1295_v13, %v1302_v46 }
 0x1fc   : > { %1323 = vst [vmem:[#allocation10] sm:$0xff] %v1303_v14 }
 0x20c   : > { %v1203_v25 = vpop.f32.mrf.mxu0  ;;  %v1274_v3 = vpop.f32.mrf.mxu1 }
 0x20d   : > { %v1204_v33 = vadd.f32 %v1203_v25, %v767_v21  ;;  %v1275_v34 = vadd.f32 %v1274_v3, %v775_v22 }
 0x20e   : > { %v1205_v30 = vpop.f32.mrf.mxu0  ;;  %v1276_v32 = vpop.f32.mrf.mxu1 }
 0x20f   : > { %v1206_v35 = vadd.f32 %v1205_v30, %v771_v23  ;;  %v1277_v36 = vadd.f32 %v1276_v32, %v779_v24 }
 0x211   : > { %v1304_v4 = vcombine.low %v1204_v33, %v1206_v35  ;;  %v1305_v37 = vcombine.low %v1275_v34, %v1277_v36 }
 0x213   : > { %v1312_v29 = vrot.slane %v1304_v4, %v1294_v7  ;;  %v1319_v38 = vrot.slane %v1305_v37, %v1294_v7 }
 0x215   : > { %v1320_v39 = vcombine.low %v1312_v29, %v1319_v38 }
 0x217   : > { %1324 = vst [vmem:[#allocation10 + $0x8] sm:$0xff] %v1320_v39 }
 0x218 PF: > { %p2009_p8 = scmp.eq.s32.totalorder %s1405_s0, 1  ;;  %s1600_s11 = smov [#allocation10]  }
 0x219   : > { %s1335_s12 = sshll.u32 %s1600_s11, 4  ;;  %s1336_s12 = int_to_ptr.vmem [resolvable:$true] %s1335_s12 }
 0x21a   : > { %s1522_s13 = scalar_lea.vmem %s1336_s12, 256  ;;  %p1529_p12 = scmp.lt.s32.totalorder %s1336_s12, %s1336_s12 }
 0x21b   : > { %p1523_p9 = scmp.ne.s32.totalorder %s1336_s12, %s1522_s13  ;;  %p1530_p13 = scmp.lt.s32.totalorder %s1522_s13, %s1522_s13 }
 0x21d   : > { %p1524_p10 = pnand %p1523_p9, %p2009_p8  ;;  %p1531_p0 = por %p1530_p13, %p1529_p12 }
 0x21f   : > { %p1525_p11 = pneg %p1524_p10 }
 0x221   : > { %p1532_p1 = pnand %p1531_p0, %p1525_p11 }
 0x223   : > { %1535 = shalt.err (!%p1532_p1)
}
 0x224   : > { %1438 = dma.vmem_to_hbm [thread:$0]  (%p2009_p8), %s1336_s12, 256, %s2044_s5, [#allocation9]  }
 0x225   : > { %1571 = dma.done.wait (%p2009_p8), [#allocation9], 256  }
 0x226   : > { %1573 = vsyncadd (%p2009_p8), [#allocation9], 4294967040 }
 0x227 PF: > { %s19_s26 = sadd.s32 1, %s1592_s26   ;;  %s2051_s22 = smov %s1580_s23 }
 0x228   : > { %p16_p2 = scmp.ge.s32.totalorder %s19_s26, 4   ;;  %s2052_s23 = smov %s1689_s7 }
 0x229   : > { %s2053_s24 = smov %s1588_s25  ;;  %s2054_s25 = smov %s2056_s1 }
 0x22a   :  { %18 = sbr.rel (!%p16_p2) target bundleno = 7 (0x7), region = 116 }
 0x22f   :  { %1348 = vsyncpa [#allocation8], 1 }
 0x230   :  { %1350 = vsyncpa [#allocation8 + $0x1], 1 }
 0x231   :  { %1351 = vsyncpa [#allocation9], 1 }
 0x232   :  { %1353 = vsyncpa [#allocation9 + $0x1], 1 }

</bundles_post_ra>
